<compile_context>
chip_gen: v5e
topology: v5e:2x2
jax: 0.10.0
libtpu: 0.0.40
codegen_flags: <defaults>
</compile_context>

<pallas_src>
import functools

import jax
import jax.numpy as jnp
from jax.experimental import pallas as pl
from jax.experimental.pallas import tpu as pltpu

EPS = 1e-5


def _res_block_kernel(x_ref, w1_ref, w2_ref, o_ref, pad_ref, col_ref, *,
                      C, H, W, P):
    # x_ref   : (1, C, H*W)           one instance, channels on sublanes,
    #                                 flattened spatial on lanes (lane dense)
    # w*_ref  : (C, 9*C)              conv weights, columns ordered (kh,kw,cin)
    # o_ref   : (1, C, H*W)
    # pad_ref : (C, P + H*W + W + 1)  zero-bordered flat activation scratch
    # col_ref : (9*C, H*W)            im2col scratch
    HW = H * W
    inv_hw = 1.0 / float(HW)

    x = x_ref[0].astype(jnp.float32)                         # (C, HW)

    # Column index of every flattened spatial position (hoisted, built once).
    col = jax.lax.broadcasted_iota(jnp.int32, (1, HW), 1) % W
    ok_left = col >= 1            # position has a valid left neighbour
    ok_right = col < (W - 1)      # position has a valid right neighbour

    # Zero the padded scratch once; only its interior is rewritten below, so
    # the borders stay zero for both conv blocks.
    pad_ref[...] = jnp.zeros(pad_ref.shape, jnp.float32)

    taps = [(dh, dw) for dh in (-1, 0, 1) for dw in (-1, 0, 1)]

    def conv3x3_inorm(inp, w2d, apply_relu):
        # In-VMEM zero padding: interior <- activation (lane-aligned offset P).
        pad_ref[:, P:P + HW] = inp
        # Gather the 9 shifted taps into the im2col scratch (9C, HW).
        for t, (dh, dw) in enumerate(taps):
            s = dh * W + dw
            tap = pad_ref[:, P + s:P + s + HW]               # (C, HW)
            if dw == 1:
                tap = jnp.where(ok_right, tap, 0.0)
            elif dw == -1:
                tap = jnp.where(ok_left, tap, 0.0)
            col_ref[t * C:(t + 1) * C, :] = tap
        # Single MXU matmul: (C, 9C) @ (9C, HW) -> (C, HW).
        y = jnp.dot(w2d, col_ref[...], preferred_element_type=jnp.float32)
        # One-pass InstanceNorm over the spatial (lane) axis.
        mean = jnp.sum(y, axis=1, keepdims=True) * inv_hw
        var = jnp.sum(y * y, axis=1, keepdims=True) * inv_hw - mean * mean
        y = (y - mean) * jax.lax.rsqrt(var + EPS)
        if apply_relu:
            y = jnp.maximum(y, 0.0)
        return y

    y = conv3x3_inorm(x, w1_ref[...].astype(jnp.float32), apply_relu=True)
    y = conv3x3_inorm(y, w2_ref[...].astype(jnp.float32), apply_relu=False)
    o_ref[0] = (y + x).astype(o_ref.dtype)                   # residual add


def _torch_weight_to_2d(w):
    # (C_out, C_in, 3, 3) -> (C_out, 9*C_in), columns ordered (kh, kw, c_in).
    c_out, c_in, kh, kw = w.shape
    return jnp.transpose(w, (0, 2, 3, 1)).reshape(c_out, kh * kw * c_in)


@jax.jit
def res_block(x_nchw, w1, b1, w2, b2):
    """ResBlock forward. x: (N, C, H, W); weights in torch (O, I, 3, 3) layout.

    b1/b2 are accepted for parity with the PyTorch module but unused: with
    InstanceNorm2d(affine=False) a per-channel conv bias cancels exactly.
    """
    del b1, b2
    N, C, H, W = x_nchw.shape
    HW = H * W
    P = ((W + 1 + 127) // 128) * 128        # lane-aligned left zero border

    x_flat = x_nchw.reshape(N, C, HW)       # free reshape -> lane-dense layout
    w1_2d = _torch_weight_to_2d(w1)
    w2_2d = _torch_weight_to_2d(w2)

    kernel = functools.partial(_res_block_kernel, C=C, H=H, W=W, P=P)
    out_flat = pl.pallas_call(
        kernel,
        out_shape=jax.ShapeDtypeStruct((N, C, HW), x_nchw.dtype),
        grid_spec=pltpu.PrefetchScalarGridSpec(
            num_scalar_prefetch=0,
            grid=(N,),
            in_specs=[
                pl.BlockSpec((1, C, HW), lambda n: (n, 0, 0)),
                pl.BlockSpec((C, 9 * C), lambda n: (0, 0)),
                pl.BlockSpec((C, 9 * C), lambda n: (0, 0)),
            ],
            out_specs=pl.BlockSpec((1, C, HW), lambda n: (n, 0, 0)),
            scratch_shapes=[
                pltpu.VMEM((C, P + HW + W + 1), jnp.float32),   # padded act
                pltpu.VMEM((9 * C, HW), jnp.float32),           # im2col
            ],
        ),
        compiler_params=pltpu.CompilerParams(
            dimension_semantics=("parallel",)),
    )(x_flat, w1_2d, w2_2d)
    return out_flat.reshape(N, C, H, W)


# ----- pure-JAX reference (with biases, two-pass norm) for verification -----
def _ref_res_block(x, w1, b1, w2, b2):
    def conv(v, w, b):
        y = jax.lax.conv_general_dilated(
            v, w, window_strides=(1, 1), padding=((1, 1), (1, 1)),
            dimension_numbers=('NCHW', 'OIHW', 'NCHW'))
        return y + b.reshape(1, -1, 1, 1)

    def inorm(y):
        m = jnp.mean(y, axis=(2, 3), keepdims=True)
        v = jnp.mean((y - m) ** 2, axis=(2, 3), keepdims=True)
        return (y - m) / jnp.sqrt(v + EPS)

    y = jax.nn.relu(inorm(conv(x, w1, b1)))
    y = inorm(conv(y, w2, b2))
    return y + x


if __name__ == "__main__":
    N, C, H, W = 2, 4, 16, 16   # ResBlock(dim=4), NCHW like PyTorch

    key = jax.random.PRNGKey(0)
    kx, kw1, kb1, kw2, kb2 = jax.random.split(key, 5)

    x = jax.random.normal(kx, (N, C, H, W), dtype=jnp.float32)

    bound = 1.0 / (C * 3 * 3) ** 0.5        # kaiming-uniform-like bound
    w1 = jax.random.uniform(kw1, (C, C, 3, 3), jnp.float32, -bound, bound)
    b1 = jax.random.uniform(kb1, (C,), jnp.float32, -bound, bound)
    w2 = jax.random.uniform(kw2, (C, C, 3, 3), jnp.float32, -bound, bound)
    b2 = jax.random.uniform(kb2, (C,), jnp.float32, -bound, bound)

    out = jax.block_until_ready(res_block(x, w1, b1, w2, b2))

    ref = _ref_res_block(x, w1, b1, w2, b2)
    assert out.shape == (N, C, H, W)
    err = float(jnp.max(jnp.abs(out - ref)))
    assert err < 1e-4, f"max abs err {err}"

    print("KERNEL_OK")
</pallas_src>

<mosaic_0001>
module attributes {stable_mosaic.version = 11 : i64} {
  func.func @_res_block_kernel(%arg0: i32, %arg1: memref<1x4x256xf32, #tpu.memory_space<vmem>>, %arg2: memref<4x36xf32, #tpu.memory_space<vmem>>, %arg3: memref<4x36xf32, #tpu.memory_space<vmem>>, %arg4: memref<1x4x256xf32, #tpu.memory_space<vmem>>, %arg5: memref<4x401xf32, #tpu.memory_space<vmem>>, %arg6: memref<36x256xf32, #tpu.memory_space<vmem>>) attributes {dimension_semantics = [#tpu.dimension_semantics<parallel>], iteration_bounds = array<i64: 2>, scalar_prefetch = 0 : i64, scratch_operands = 2 : i64, tpu.core_type = #tpu.core_type<tc>, window_params = [{transform_indices = @transform_0, window_bounds = array<i64: 1, 4, 256>}, {pipeline_mode = #tpu.pipeline_mode<synchronous>, transform_indices = @transform_1, window_bounds = array<i64: 4, 36>}, {pipeline_mode = #tpu.pipeline_mode<synchronous>, transform_indices = @transform_2, window_bounds = array<i64: 4, 36>}, {transform_indices = @transform_3, window_bounds = array<i64: 1, 4, 256>}]} {
    %c0 = arith.constant 0 : index
    %c0_0 = arith.constant 0 : index
    %c0_1 = arith.constant 0 : index
    %0 = vector.load %arg1[%c0, %c0_0, %c0_1] : memref<1x4x256xf32, #tpu.memory_space<vmem>>, vector<1x4x256xf32>
    %1 = vector.shape_cast %0 : vector<1x4x256xf32> to vector<4x256xf32>
    %2 = tpu.iota {dimensions = array<i32: 1>} : vector<1x256xi32>
    %c16_i32 = arith.constant 16 : i32
    %c0_i32 = arith.constant 0 : i32
    %3 = arith.cmpi eq, %c16_i32, %c0_i32 : i32
    %c1_i32 = arith.constant 1 : i32
    %4 = arith.select %3, %c1_i32, %c16_i32 : i32
    %5 = vector.broadcast %4 : i32 to vector<1x256xi32>
    %6 = arith.remsi %2, %5 : vector<1x256xi32>
    %c0_i32_2 = arith.constant 0 : i32
    %7 = vector.broadcast %c0_i32_2 : i32 to vector<1x256xi32>
    %8 = arith.cmpi ne, %6, %7 : vector<1x256xi32>
    %c0_i32_3 = arith.constant 0 : i32
    %9 = vector.broadcast %c0_i32_3 : i32 to vector<1x256xi32>
    %10 = arith.cmpi slt, %6, %9 : vector<1x256xi32>
    %c0_i32_4 = arith.constant 0 : i32
    %11 = arith.cmpi slt, %4, %c0_i32_4 : i32
    %12 = vector.broadcast %11 : i1 to vector<1x256xi1>
    %13 = vector.broadcast %12 : vector<1x256xi1> to vector<1x256xi1>
    %14 = arith.xori %10, %13 : vector<1x256xi1>
    %15 = arith.andi %14, %8 : vector<1x256xi1>
    %16 = vector.broadcast %4 : i32 to vector<1x256xi32>
    %17 = arith.addi %6, %16 : vector<1x256xi32>
    %18 = arith.select %15, %17, %6 : vector<1x256xi1>, vector<1x256xi32>
    %c1_i32_5 = arith.constant 1 : i32
    %19 = vector.broadcast %c1_i32_5 : i32 to vector<1x256xi32>
    %20 = arith.cmpi sge, %18, %19 : vector<1x256xi32>
    %c15_i32 = arith.constant 15 : i32
    %21 = vector.broadcast %c15_i32 : i32 to vector<1x256xi32>
    %22 = arith.cmpi slt, %18, %21 : vector<1x256xi32>
    %cst = arith.constant 0.000000e+00 : f32
    %23 = vector.broadcast %cst : f32 to vector<4x401xf32>
    %c0_6 = arith.constant 0 : index
    %c0_7 = arith.constant 0 : index
    %24 = vector.load %arg5[%c0_6, %c0_7] : memref<4x401xf32, #tpu.memory_space<vmem>>, vector<4x401xf32>
    tpu.vector_store %arg5[%c0_6, %c0_7], %23 {strides = array<i32>} : memref<4x401xf32, #tpu.memory_space<vmem>>, vector<4x401xf32>,
    %c0_8 = arith.constant 0 : index
    %c0_9 = arith.constant 0 : index
    %25 = vector.load %arg2[%c0_8, %c0_9] : memref<4x36xf32, #tpu.memory_space<vmem>>, vector<4x36xf32>
    %c0_10 = arith.constant 0 : index
    %c128 = arith.constant 128 : index
    %26 = vector.load %arg5[%c0_10, %c128] : memref<4x401xf32, #tpu.memory_space<vmem>>, vector<4x256xf32>
    tpu.vector_store %arg5[%c0_10, %c128], %1 {strides = array<i32>} : memref<4x401xf32, #tpu.memory_space<vmem>>, vector<4x256xf32>,
    %c0_11 = arith.constant 0 : index
    %c111 = arith.constant 111 : index
    %27 = vector.load %arg5[%c0_11, %c111] : memref<4x401xf32, #tpu.memory_space<vmem>>, vector<4x256xf32>
    %cst_12 = arith.constant 0.000000e+00 : f32
    %28 = vector.shape_cast %20 : vector<1x256xi1> to vector<1x256xi1>
    %29 = vector.broadcast %28 : vector<1x256xi1> to vector<4x256xi1>
    %30 = vector.broadcast %cst_12 : f32 to vector<4x256xf32>
    %31 = arith.select %29, %27, %30 : vector<4x256xi1>, vector<4x256xf32>
    %c0_13 = arith.constant 0 : index
    %c0_14 = arith.constant 0 : index
    %32 = vector.load %arg6[%c0_13, %c0_14] : memref<36x256xf32, #tpu.memory_space<vmem>>, vector<4x256xf32>
    tpu.vector_store %arg6[%c0_13, %c0_14], %31 {strides = array<i32>} : memref<36x256xf32, #tpu.memory_space<vmem>>, vector<4x256xf32>,
    %c0_15 = arith.constant 0 : index
    %c112 = arith.constant 112 : index
    %33 = vector.load %arg5[%c0_15, %c112] : memref<4x401xf32, #tpu.memory_space<vmem>>, vector<4x256xf32>
    %c4 = arith.constant 4 : index
    %c0_16 = arith.constant 0 : index
    %34 = vector.load %arg6[%c4, %c0_16] : memref<36x256xf32, #tpu.memory_space<vmem>>, vector<4x256xf32>
    tpu.vector_store %arg6[%c4, %c0_16], %33 {strides = array<i32>} : memref<36x256xf32, #tpu.memory_space<vmem>>, vector<4x256xf32>,
    %c0_17 = arith.constant 0 : index
    %c113 = arith.constant 113 : index
    %35 = vector.load %arg5[%c0_17, %c113] : memref<4x401xf32, #tpu.memory_space<vmem>>, vector<4x256xf32>
    %cst_18 = arith.constant 0.000000e+00 : f32
    %36 = vector.shape_cast %22 : vector<1x256xi1> to vector<1x256xi1>
    %37 = vector.broadcast %36 : vector<1x256xi1> to vector<4x256xi1>
    %38 = vector.broadcast %cst_18 : f32 to vector<4x256xf32>
    %39 = arith.select %37, %35, %38 : vector<4x256xi1>, vector<4x256xf32>
    %c8 = arith.constant 8 : index
    %c0_19 = arith.constant 0 : index
    %40 = vector.load %arg6[%c8, %c0_19] : memref<36x256xf32, #tpu.memory_space<vmem>>, vector<4x256xf32>
    tpu.vector_store %arg6[%c8, %c0_19], %39 {strides = array<i32>} : memref<36x256xf32, #tpu.memory_space<vmem>>, vector<4x256xf32>,
    %c0_20 = arith.constant 0 : index
    %c127 = arith.constant 127 : index
    %41 = vector.load %arg5[%c0_20, %c127] : memref<4x401xf32, #tpu.memory_space<vmem>>, vector<4x256xf32>
    %cst_21 = arith.constant 0.000000e+00 : f32
    %42 = vector.shape_cast %20 : vector<1x256xi1> to vector<1x256xi1>
    %43 = vector.broadcast %42 : vector<1x256xi1> to vector<4x256xi1>
    %44 = vector.broadcast %cst_21 : f32 to vector<4x256xf32>
    %45 = arith.select %43, %41, %44 : vector<4x256xi1>, vector<4x256xf32>
    %c12 = arith.constant 12 : index
    %c0_22 = arith.constant 0 : index
    %46 = vector.load %arg6[%c12, %c0_22] : memref<36x256xf32, #tpu.memory_space<vmem>>, vector<4x256xf32>
    tpu.vector_store %arg6[%c12, %c0_22], %45 {strides = array<i32>} : memref<36x256xf32, #tpu.memory_space<vmem>>, vector<4x256xf32>,
    %c0_23 = arith.constant 0 : index
    %c128_24 = arith.constant 128 : index
    %47 = vector.load %arg5[%c0_23, %c128_24] : memref<4x401xf32, #tpu.memory_space<vmem>>, vector<4x256xf32>
    %c16 = arith.constant 16 : index
    %c0_25 = arith.constant 0 : index
    %48 = vector.load %arg6[%c16, %c0_25] : memref<36x256xf32, #tpu.memory_space<vmem>>, vector<4x256xf32>
    tpu.vector_store %arg6[%c16, %c0_25], %47 {strides = array<i32>} : memref<36x256xf32, #tpu.memory_space<vmem>>, vector<4x256xf32>,
    %c0_26 = arith.constant 0 : index
    %c129 = arith.constant 129 : index
    %49 = vector.load %arg5[%c0_26, %c129] : memref<4x401xf32, #tpu.memory_space<vmem>>, vector<4x256xf32>
    %cst_27 = arith.constant 0.000000e+00 : f32
    %50 = vector.shape_cast %22 : vector<1x256xi1> to vector<1x256xi1>
    %51 = vector.broadcast %50 : vector<1x256xi1> to vector<4x256xi1>
    %52 = vector.broadcast %cst_27 : f32 to vector<4x256xf32>
    %53 = arith.select %51, %49, %52 : vector<4x256xi1>, vector<4x256xf32>
    %c20 = arith.constant 20 : index
    %c0_28 = arith.constant 0 : index
    %54 = vector.load %arg6[%c20, %c0_28] : memref<36x256xf32, #tpu.memory_space<vmem>>, vector<4x256xf32>
    tpu.vector_store %arg6[%c20, %c0_28], %53 {strides = array<i32>} : memref<36x256xf32, #tpu.memory_space<vmem>>, vector<4x256xf32>,
    %c0_29 = arith.constant 0 : index
    %c143 = arith.constant 143 : index
    %55 = vector.load %arg5[%c0_29, %c143] : memref<4x401xf32, #tpu.memory_space<vmem>>, vector<4x256xf32>
    %cst_30 = arith.constant 0.000000e+00 : f32
    %56 = vector.shape_cast %20 : vector<1x256xi1> to vector<1x256xi1>
    %57 = vector.broadcast %56 : vector<1x256xi1> to vector<4x256xi1>
    %58 = vector.broadcast %cst_30 : f32 to vector<4x256xf32>
    %59 = arith.select %57, %55, %58 : vector<4x256xi1>, vector<4x256xf32>
    %c24 = arith.constant 24 : index
    %c0_31 = arith.constant 0 : index
    %60 = vector.load %arg6[%c24, %c0_31] : memref<36x256xf32, #tpu.memory_space<vmem>>, vector<4x256xf32>
    tpu.vector_store %arg6[%c24, %c0_31], %59 {strides = array<i32>} : memref<36x256xf32, #tpu.memory_space<vmem>>, vector<4x256xf32>,
    %c0_32 = arith.constant 0 : index
    %c144 = arith.constant 144 : index
    %61 = vector.load %arg5[%c0_32, %c144] : memref<4x401xf32, #tpu.memory_space<vmem>>, vector<4x256xf32>
    %c28 = arith.constant 28 : index
    %c0_33 = arith.constant 0 : index
    %62 = vector.load %arg6[%c28, %c0_33] : memref<36x256xf32, #tpu.memory_space<vmem>>, vector<4x256xf32>
    tpu.vector_store %arg6[%c28, %c0_33], %61 {strides = array<i32>} : memref<36x256xf32, #tpu.memory_space<vmem>>, vector<4x256xf32>,
    %c0_34 = arith.constant 0 : index
    %c145 = arith.constant 145 : index
    %63 = vector.load %arg5[%c0_34, %c145] : memref<4x401xf32, #tpu.memory_space<vmem>>, vector<4x256xf32>
    %cst_35 = arith.constant 0.000000e+00 : f32
    %64 = vector.shape_cast %22 : vector<1x256xi1> to vector<1x256xi1>
    %65 = vector.broadcast %64 : vector<1x256xi1> to vector<4x256xi1>
    %66 = vector.broadcast %cst_35 : f32 to vector<4x256xf32>
    %67 = arith.select %65, %63, %66 : vector<4x256xi1>, vector<4x256xf32>
    %c32 = arith.constant 32 : index
    %c0_36 = arith.constant 0 : index
    %68 = vector.load %arg6[%c32, %c0_36] : memref<36x256xf32, #tpu.memory_space<vmem>>, vector<4x256xf32>
    tpu.vector_store %arg6[%c32, %c0_36], %67 {strides = array<i32>} : memref<36x256xf32, #tpu.memory_space<vmem>>, vector<4x256xf32>,
    %c0_37 = arith.constant 0 : index
    %c0_38 = arith.constant 0 : index
    %69 = vector.load %arg6[%c0_37, %c0_38] : memref<36x256xf32, #tpu.memory_space<vmem>>, vector<36x256xf32>
    %cst_39 = arith.constant dense<0.000000e+00> : vector<4x256xf32>
    %70 = tpu.matmul %25, %69, %cst_39 {dimension_numbers = #tpu.dot_dimension_numbers<[1], [0], [0], [1], [0, 0, 1, 1], [], []>} : vector<4x36xf32>, vector<36x256xf32>, vector<4x256xf32> -> vector<4x256xf32>
    %cst_40 = arith.constant dense<0.000000e+00> : vector<4xf32>
    %71 = vector.multi_reduction <add>, %70, %cst_40 [1] : vector<4x256xf32> to vector<4xf32>
    %72 = vector.shape_cast %71 : vector<4xf32> to vector<4x1xf32>
    %cst_41 = arith.constant 3.906250e-03 : f32
    %73 = vector.broadcast %cst_41 : f32 to vector<4x1xf32>
    %74 = arith.mulf %72, %73 : vector<4x1xf32>
    %75 = arith.mulf %70, %70 : vector<4x256xf32>
    %cst_42 = arith.constant dense<0.000000e+00> : vector<4xf32>
    %76 = vector.multi_reduction <add>, %75, %cst_42 [1] : vector<4x256xf32> to vector<4xf32>
    %77 = vector.shape_cast %76 : vector<4xf32> to vector<4x1xf32>
    %cst_43 = arith.constant 3.906250e-03 : f32
    %78 = vector.broadcast %cst_43 : f32 to vector<4x1xf32>
    %79 = arith.mulf %77, %78 : vector<4x1xf32>
    %80 = arith.mulf %74, %74 : vector<4x1xf32>
    %81 = arith.subf %79, %80 : vector<4x1xf32>
    %82 = vector.broadcast %74 : vector<4x1xf32> to vector<4x256xf32>
    %83 = arith.subf %70, %82 : vector<4x256xf32>
    %cst_44 = arith.constant 9.99999974E-6 : f32
    %84 = vector.broadcast %cst_44 : f32 to vector<4x1xf32>
    %85 = arith.addf %81, %84 : vector<4x1xf32>
    %86 = math.rsqrt %85 : vector<4x1xf32>
    %87 = vector.broadcast %86 : vector<4x1xf32> to vector<4x256xf32>
    %88 = arith.mulf %83, %87 : vector<4x256xf32>
    %cst_45 = arith.constant 0.000000e+00 : f32
    %89 = vector.broadcast %cst_45 : f32 to vector<4x256xf32>
    %90 = arith.maximumf %88, %89 : vector<4x256xf32>
    %c0_46 = arith.constant 0 : index
    %c0_47 = arith.constant 0 : index
    %91 = vector.load %arg3[%c0_46, %c0_47] : memref<4x36xf32, #tpu.memory_space<vmem>>, vector<4x36xf32>
    %c0_48 = arith.constant 0 : index
    %c128_49 = arith.constant 128 : index
    %92 = vector.load %arg5[%c0_48, %c128_49] : memref<4x401xf32, #tpu.memory_space<vmem>>, vector<4x256xf32>
    tpu.vector_store %arg5[%c0_48, %c128_49], %90 {strides = array<i32>} : memref<4x401xf32, #tpu.memory_space<vmem>>, vector<4x256xf32>,
    %c0_50 = arith.constant 0 : index
    %c111_51 = arith.constant 111 : index
    %93 = vector.load %arg5[%c0_50, %c111_51] : memref<4x401xf32, #tpu.memory_space<vmem>>, vector<4x256xf32>
    %cst_52 = arith.constant 0.000000e+00 : f32
    %94 = vector.shape_cast %20 : vector<1x256xi1> to vector<1x256xi1>
    %95 = vector.broadcast %94 : vector<1x256xi1> to vector<4x256xi1>
    %96 = vector.broadcast %cst_52 : f32 to vector<4x256xf32>
    %97 = arith.select %95, %93, %96 : vector<4x256xi1>, vector<4x256xf32>
    %c0_53 = arith.constant 0 : index
    %c0_54 = arith.constant 0 : index
    %98 = vector.load %arg6[%c0_53, %c0_54] : memref<36x256xf32, #tpu.memory_space<vmem>>, vector<4x256xf32>
    tpu.vector_store %arg6[%c0_53, %c0_54], %97 {strides = array<i32>} : memref<36x256xf32, #tpu.memory_space<vmem>>, vector<4x256xf32>,
    %c0_55 = arith.constant 0 : index
    %c112_56 = arith.constant 112 : index
    %99 = vector.load %arg5[%c0_55, %c112_56] : memref<4x401xf32, #tpu.memory_space<vmem>>, vector<4x256xf32>
    %c4_57 = arith.constant 4 : index
    %c0_58 = arith.constant 0 : index
    %100 = vector.load %arg6[%c4_57, %c0_58] : memref<36x256xf32, #tpu.memory_space<vmem>>, vector<4x256xf32>
    tpu.vector_store %arg6[%c4_57, %c0_58], %99 {strides = array<i32>} : memref<36x256xf32, #tpu.memory_space<vmem>>, vector<4x256xf32>,
    %c0_59 = arith.constant 0 : index
    %c113_60 = arith.constant 113 : index
    %101 = vector.load %arg5[%c0_59, %c113_60] : memref<4x401xf32, #tpu.memory_space<vmem>>, vector<4x256xf32>
    %cst_61 = arith.constant 0.000000e+00 : f32
    %102 = vector.shape_cast %22 : vector<1x256xi1> to vector<1x256xi1>
    %103 = vector.broadcast %102 : vector<1x256xi1> to vector<4x256xi1>
    %104 = vector.broadcast %cst_61 : f32 to vector<4x256xf32>
    %105 = arith.select %103, %101, %104 : vector<4x256xi1>, vector<4x256xf32>
    %c8_62 = arith.constant 8 : index
    %c0_63 = arith.constant 0 : index
    %106 = vector.load %arg6[%c8_62, %c0_63] : memref<36x256xf32, #tpu.memory_space<vmem>>, vector<4x256xf32>
    tpu.vector_store %arg6[%c8_62, %c0_63], %105 {strides = array<i32>} : memref<36x256xf32, #tpu.memory_space<vmem>>, vector<4x256xf32>,
    %c0_64 = arith.constant 0 : index
    %c127_65 = arith.constant 127 : index
    %107 = vector.load %arg5[%c0_64, %c127_65] : memref<4x401xf32, #tpu.memory_space<vmem>>, vector<4x256xf32>
    %cst_66 = arith.constant 0.000000e+00 : f32
    %108 = vector.shape_cast %20 : vector<1x256xi1> to vector<1x256xi1>
    %109 = vector.broadcast %108 : vector<1x256xi1> to vector<4x256xi1>
    %110 = vector.broadcast %cst_66 : f32 to vector<4x256xf32>
    %111 = arith.select %109, %107, %110 : vector<4x256xi1>, vector<4x256xf32>
    %c12_67 = arith.constant 12 : index
    %c0_68 = arith.constant 0 : index
    %112 = vector.load %arg6[%c12_67, %c0_68] : memref<36x256xf32, #tpu.memory_space<vmem>>, vector<4x256xf32>
    tpu.vector_store %arg6[%c12_67, %c0_68], %111 {strides = array<i32>} : memref<36x256xf32, #tpu.memory_space<vmem>>, vector<4x256xf32>,
    %c0_69 = arith.constant 0 : index
    %c128_70 = arith.constant 128 : index
    %113 = vector.load %arg5[%c0_69, %c128_70] : memref<4x401xf32, #tpu.memory_space<vmem>>, vector<4x256xf32>
    %c16_71 = arith.constant 16 : index
    %c0_72 = arith.constant 0 : index
    %114 = vector.load %arg6[%c16_71, %c0_72] : memref<36x256xf32, #tpu.memory_space<vmem>>, vector<4x256xf32>
    tpu.vector_store %arg6[%c16_71, %c0_72], %113 {strides = array<i32>} : memref<36x256xf32, #tpu.memory_space<vmem>>, vector<4x256xf32>,
    %c0_73 = arith.constant 0 : index
    %c129_74 = arith.constant 129 : index
    %115 = vector.load %arg5[%c0_73, %c129_74] : memref<4x401xf32, #tpu.memory_space<vmem>>, vector<4x256xf32>
    %cst_75 = arith.constant 0.000000e+00 : f32
    %116 = vector.shape_cast %22 : vector<1x256xi1> to vector<1x256xi1>
    %117 = vector.broadcast %116 : vector<1x256xi1> to vector<4x256xi1>
    %118 = vector.broadcast %cst_75 : f32 to vector<4x256xf32>
    %119 = arith.select %117, %115, %118 : vector<4x256xi1>, vector<4x256xf32>
    %c20_76 = arith.constant 20 : index
    %c0_77 = arith.constant 0 : index
    %120 = vector.load %arg6[%c20_76, %c0_77] : memref<36x256xf32, #tpu.memory_space<vmem>>, vector<4x256xf32>
    tpu.vector_store %arg6[%c20_76, %c0_77], %119 {strides = array<i32>} : memref<36x256xf32, #tpu.memory_space<vmem>>, vector<4x256xf32>,
    %c0_78 = arith.constant 0 : index
    %c143_79 = arith.constant 143 : index
    %121 = vector.load %arg5[%c0_78, %c143_79] : memref<4x401xf32, #tpu.memory_space<vmem>>, vector<4x256xf32>
    %cst_80 = arith.constant 0.000000e+00 : f32
    %122 = vector.shape_cast %20 : vector<1x256xi1> to vector<1x256xi1>
    %123 = vector.broadcast %122 : vector<1x256xi1> to vector<4x256xi1>
    %124 = vector.broadcast %cst_80 : f32 to vector<4x256xf32>
    %125 = arith.select %123, %121, %124 : vector<4x256xi1>, vector<4x256xf32>
    %c24_81 = arith.constant 24 : index
    %c0_82 = arith.constant 0 : index
    %126 = vector.load %arg6[%c24_81, %c0_82] : memref<36x256xf32, #tpu.memory_space<vmem>>, vector<4x256xf32>
    tpu.vector_store %arg6[%c24_81, %c0_82], %125 {strides = array<i32>} : memref<36x256xf32, #tpu.memory_space<vmem>>, vector<4x256xf32>,
    %c0_83 = arith.constant 0 : index
    %c144_84 = arith.constant 144 : index
    %127 = vector.load %arg5[%c0_83, %c144_84] : memref<4x401xf32, #tpu.memory_space<vmem>>, vector<4x256xf32>
    %c28_85 = arith.constant 28 : index
    %c0_86 = arith.constant 0 : index
    %128 = vector.load %arg6[%c28_85, %c0_86] : memref<36x256xf32, #tpu.memory_space<vmem>>, vector<4x256xf32>
    tpu.vector_store %arg6[%c28_85, %c0_86], %127 {strides = array<i32>} : memref<36x256xf32, #tpu.memory_space<vmem>>, vector<4x256xf32>,
    %c0_87 = arith.constant 0 : index
    %c145_88 = arith.constant 145 : index
    %129 = vector.load %arg5[%c0_87, %c145_88] : memref<4x401xf32, #tpu.memory_space<vmem>>, vector<4x256xf32>
    %cst_89 = arith.constant 0.000000e+00 : f32
    %130 = vector.shape_cast %22 : vector<1x256xi1> to vector<1x256xi1>
    %131 = vector.broadcast %130 : vector<1x256xi1> to vector<4x256xi1>
    %132 = vector.broadcast %cst_89 : f32 to vector<4x256xf32>
    %133 = arith.select %131, %129, %132 : vector<4x256xi1>, vector<4x256xf32>
    %c32_90 = arith.constant 32 : index
    %c0_91 = arith.constant 0 : index
    %134 = vector.load %arg6[%c32_90, %c0_91] : memref<36x256xf32, #tpu.memory_space<vmem>>, vector<4x256xf32>
    tpu.vector_store %arg6[%c32_90, %c0_91], %133 {strides = array<i32>} : memref<36x256xf32, #tpu.memory_space<vmem>>, vector<4x256xf32>,
    %c0_92 = arith.constant 0 : index
    %c0_93 = arith.constant 0 : index
    %135 = vector.load %arg6[%c0_92, %c0_93] : memref<36x256xf32, #tpu.memory_space<vmem>>, vector<36x256xf32>
    %cst_94 = arith.constant dense<0.000000e+00> : vector<4x256xf32>
    %136 = tpu.matmul %91, %135, %cst_94 {dimension_numbers = #tpu.dot_dimension_numbers<[1], [0], [0], [1], [0, 0, 1, 1], [], []>} : vector<4x36xf32>, vector<36x256xf32>, vector<4x256xf32> -> vector<4x256xf32>
    %cst_95 = arith.constant dense<0.000000e+00> : vector<4xf32>
    %137 = vector.multi_reduction <add>, %136, %cst_95 [1] : vector<4x256xf32> to vector<4xf32>
    %138 = vector.shape_cast %137 : vector<4xf32> to vector<4x1xf32>
    %cst_96 = arith.constant 3.906250e-03 : f32
    %139 = vector.broadcast %cst_96 : f32 to vector<4x1xf32>
    %140 = arith.mulf %138, %139 : vector<4x1xf32>
    %141 = arith.mulf %136, %136 : vector<4x256xf32>
    %cst_97 = arith.constant dense<0.000000e+00> : vector<4xf32>
    %142 = vector.multi_reduction <add>, %141, %cst_97 [1] : vector<4x256xf32> to vector<4xf32>
    %143 = vector.shape_cast %142 : vector<4xf32> to vector<4x1xf32>
    %cst_98 = arith.constant 3.906250e-03 : f32
    %144 = vector.broadcast %cst_98 : f32 to vector<4x1xf32>
    %145 = arith.mulf %143, %144 : vector<4x1xf32>
    %146 = arith.mulf %140, %140 : vector<4x1xf32>
    %147 = arith.subf %145, %146 : vector<4x1xf32>
    %148 = vector.broadcast %140 : vector<4x1xf32> to vector<4x256xf32>
    %149 = arith.subf %136, %148 : vector<4x256xf32>
    %cst_99 = arith.constant 9.99999974E-6 : f32
    %150 = vector.broadcast %cst_99 : f32 to vector<4x1xf32>
    %151 = arith.addf %147, %150 : vector<4x1xf32>
    %152 = math.rsqrt %151 : vector<4x1xf32>
    %153 = vector.broadcast %152 : vector<4x1xf32> to vector<4x256xf32>
    %154 = arith.mulf %149, %153 : vector<4x256xf32>
    %155 = arith.addf %154, %1 : vector<4x256xf32>
    %c0_100 = arith.constant 0 : index
    %c0_101 = arith.constant 0 : index
    %c0_102 = arith.constant 0 : index
    %156 = vector.load %arg4[%c0_100, %c0_101, %c0_102] : memref<1x4x256xf32, #tpu.memory_space<vmem>>, vector<1x4x256xf32>
    %157 = vector.shape_cast %156 : vector<1x4x256xf32> to vector<4x256xf32>
    %158 = vector.shape_cast %155 : vector<4x256xf32> to vector<1x4x256xf32>
    tpu.vector_store %arg4[%c0_100, %c0_101, %c0_102], %158 {strides = array<i32>} : memref<1x4x256xf32, #tpu.memory_space<vmem>>, vector<1x4x256xf32>,
    return
  }
  func.func @transform_0(%arg0: i32) -> (i32, i32, i32) {
    %c0_i32 = arith.constant 0 : i32
    %c0_i32_0 = arith.constant 0 : i32
    %c0_i32_1 = arith.constant 0 : i32
    return %arg0, %c0_i32, %c0_i32_0 : i32, i32, i32
  }
  func.func @transform_1(%arg0: i32) -> (i32, i32) {
    %c0_i32 = arith.constant 0 : i32
    %c0_i32_0 = arith.constant 0 : i32
    %c0_i32_1 = arith.constant 0 : i32
    return %c0_i32, %c0_i32_0 : i32, i32
  }
  func.func @transform_2(%arg0: i32) -> (i32, i32) {
    %c0_i32 = arith.constant 0 : i32
    %c0_i32_0 = arith.constant 0 : i32
    %c0_i32_1 = arith.constant 0 : i32
    return %c0_i32, %c0_i32_0 : i32, i32
  }
  func.func @transform_3(%arg0: i32) -> (i32, i32, i32) {
    %c0_i32 = arith.constant 0 : i32
    %c0_i32_0 = arith.constant 0 : i32
    %c0_i32_1 = arith.constant 0 : i32
    return %arg0, %c0_i32, %c0_i32_0 : i32, i32, i32
  }
}

</mosaic_0001>

<bundles_post_ra>
// kernel: res_block.1
= control target key start
LH: loop header
LB: loop body
LE: loop exit
PB: predicated region body
PF: predicated region fallthrough
CT: control target
= control target key end

     0   :  { %s986_s12 = smov 0   ;;  %s1224_s0 = inlined_call_operand.vmem [shape: f32[2,4,256], index: 0, kind: input, shape index: {}]   ;;  %s1225_s1 = inlined_call_operand.vmem [shape: f32[4,36], index: 1, kind: input, shape index: {}]   ;;  %s1226_s2 = inlined_call_operand.vmem [shape: f32[4,36], index: 2, kind: input, shape index: {}]   ;;  %s1227_s3 = inlined_call_operand.vmem [shape: f32[2,4,256], index: 3, kind: output, shape index: {}]  }
   0x1 LB: > { %s907_s13 = sadd.s32 4294967295, %s955_s12   ;;  %p911_p0 = scmp.ge.s32.totalorder %s955_s12, 1  ;;  %s955_s12 = sphi %s986_s12, %s13_s12  }
   0x2   : > { %p137_p1 = scmp.lt.s32.totalorder %s955_s12, 3 }
   0x4   : > { %p138_p2 = pnand %p911_p0, %p137_p1 }
   0x5   : > { %p161_p3 = scmp.lt.s32.totalorder (!%p138_p2), %s907_s13, 1  ;;  %s958_s18 = smov (!%p138_p2), 15  }
   0x6   : > { %141 = sbr.rel (%p138_p2) target bundleno = 1038 (0x40e), region = 32  ;;  %s959_s19 = smov (!%p138_p2), 1  }
   0x7   : > { %s960_s20 = smov (!%p138_p2), 127   ;;  %s961_s21 = smov (!%p138_p2), 113  }
   0x8   : > { %s962_s22 = smov (!%p138_p2), 112   ;;  %s963_s23 = smov (!%p138_p2), 111  }
   0x9   : > { %s964_s24 = smov (!%p138_p2), 17   ;;  %s965_s25 = smov (!%p138_p2), 16  }
   0xb   : > { %vm204_vm0 = vcmask 1043456   ;;  %vm205_vm1 = vcmask 138244   ;;  %v957_v0 = vmov 0.0   ;;  %s1240_s13 = smov (!%p161_p3, %s907_s13), 1  ;;  %v172_v38 = vlaneseq }
   0xc   : > { %203 = vst [vmem:[#allocation2] sm:$0xff] %v957_v0  ;;  %vm206_vm2 = vmor %vm205_vm1, %vm204_vm0  ;;  %s926_s14 = sshll.u32 %s1240_s13, 3  ;;  %vm283_vm3 = vcmask 121856   ;;  %vm348_vm6 = vcmask 1039360   ;;  %vm308_vm7 = vcmask 7168   ;;  %vm379_vm10 = vcmask 924672  }
   0xd   : > { %207 = vst.msk [vmem:[#allocation2 + $0x8] sm:$0xff] %vm206_vm2, %v957_v0  ;;  %s165_s17 = scalar_lea.vmem %s1224_s0, %s926_s14  ;;  %v173_v40 = vand.u32 127, %v172_v38  ;;  %vm405_vm11 = vcmask 916480   ;;  %vm428_vm12 = vcmask 908288   ;;  %vm230_vm13 = vcmask 138240   ;;  %s170_s5 = scalar_lea.vmem %s1227_s3, %s926_s14 }
   0xe   : > { %v1003_v1 = vld [vmem:[%s165_s17] sm:$0xff]  ;;  %vm256_vm14 = vcmask 130048   ;;  %vm1228_vm15 = vcmask 293888  }
   0xf   : > { %209 = vst [vmem:[#allocation2 + $0x4] sm:$0xff] %v1003_v1  ;;  %v174_v41 = vadd.s32 128, %v173_v40  ;;  %v179_v44 = vand.u32 15, %v173_v40 }
  0x11   : > { %v186_v43 = vand.u32 15, %v174_v41  ;;  %vm1057_vm5 = vcmp.lt.s32.totalorder %v179_v44, 15  ;;  %vm1074_vm9 = vcmp.ge.s32.totalorder %v179_v44, 1 }
  0x13   : > { %vm1053_vm4 = vcmp.lt.s32.totalorder %v186_v43, 15  ;;  %vm1070_vm8 = vcmp.ge.s32.totalorder %v186_v43, 1 }
  0x14   : > { %v333_v16 = vld [vmem:[#allocation2 + $0xc] sm:$0xf] }
  0x15   : > { %v364_v20 = vld [vmem:[#allocation2 + $0xc] sm:$0xf] }
  0x16   : > { %v210_v2 = vld [vmem:[#allocation2] sm:$0xff]  ;;  %v211_v3 = vld [vmem:[#allocation2 + $0x8] sm:$0xf]  ;;  %v389_v26 = vld [vmem:[#allocation2 + $0xc] sm:$0xf] }
  0x17   : > { %218 = vst [vmem:[#allocation1] ss:$2 sm:$0xff] %v210_v2  ;;  %v240_v4 = vld [vmem:[#allocation2 + $0x8] sm:$0xf]  ;;  %v413_v30 = vld [vmem:[#allocation2 + $0xc] sm:$0xf] }
  0x18   : > { %220 = vst [vmem:[#allocation1 + $0x10] ss:$2 sm:$0xff] %v211_v3  ;;  %v264_v8 = vld [vmem:[#allocation2 + $0x8] sm:$0xf] }
  0x19   : > { %v293_v12 = vld [vmem:[#allocation2 + $0x8] sm:$0xf] }
  0x1e   : > { %v1006_v5 = vld.sshfl [vmem:[#allocation1] sm:$0xff pattern:$0x75316420]  ;;  %v1008_v6 = vld.sshfl [vmem:[#allocation1 + $0x8] sm:$0xff pattern:$0x75316420] }
  0x1f   : > { %244 = vst [vmem:[#allocation1 + $0x1] ss:$2 sm:$0xff] %v210_v2  ;;  %v1010_v7 = vld.sshfl [vmem:[#allocation1 + $0x10] sm:$0xff pattern:$0x75316420] }
  0x20   : > { %246 = vst [vmem:[#allocation1 + $0x11] ss:$2 sm:$0xff] %v240_v4 }
  0x26   : > { %v1012_v9 = vld.sshfl [vmem:[#allocation1] sm:$0xff pattern:$0x75316420]  ;;  %v1014_v10 = vld.sshfl [vmem:[#allocation1 + $0x8] sm:$0xff pattern:$0x75316420] }
  0x27   : > { %271 = vst [vmem:[#allocation1] ss:$2 sm:$0xff] %v210_v2  ;;  %v1016_v11 = vld.sshfl [vmem:[#allocation1 + $0x10] sm:$0xff pattern:$0x75316420] }
  0x28   : > { %273 = vst [vmem:[#allocation1 + $0x10] ss:$2 sm:$0xff] %v264_v8 }
  0x2e   : > { %v275_v13 = vld.sshfl [vmem:[#allocation1 + $0x8] sm:$0xff pattern:$0x75316420]  ;;  %v274_v14 = vld.sshfl [vmem:[#allocation1] sm:$0xff pattern:$0x75316420] }
  0x2f   : > { %279 = vrot.lane.b32.xlu1 %v275_v13, %s958_s18  ;;  %277 = vrot.lane.b32.xlu0 %v274_v14, %s958_s18  ;;  %296 = vst [vmem:[#allocation1] ss:$2 sm:$0xff] %v210_v2  ;;  %v276_v15 = vld.sshfl [vmem:[#allocation1 + $0x10] sm:$0xff pattern:$0x75316420] }
  0x30   : > { %281 = vrot.lane.b32.xlu2 %v276_v15, %s958_s18  ;;  %298 = vst [vmem:[#allocation1 + $0x10] ss:$2 sm:$0xff] %v293_v12 }
  0x36   : > { %v300_v17 = vld.sshfl [vmem:[#allocation1 + $0x8] sm:$0xff pattern:$0x75316420]  ;;  %v299_v18 = vld.sshfl [vmem:[#allocation1] sm:$0xff pattern:$0x75316420] }
  0x37   : > { %304 = vrot.lane.b32.xlu1 %v300_v17, %s959_s19  ;;  %302 = vrot.lane.b32.xlu0 %v299_v18, %s959_s19  ;;  %325 = vst [vmem:[#allocation1] ss:$2 sm:$0xff] %v1003_v1  ;;  %v301_v19 = vld.sshfl [vmem:[#allocation1 + $0x10] sm:$0xff pattern:$0x75316420] }
  0x38   : > { %306 = vrot.lane.b32.xlu2 %v301_v19, %s959_s19  ;;  %338 = vst [vmem:[#allocation1 + $0x10] ss:$2 sm:$0xff] %v333_v16 }
  0x3e   : > { %v326_v21 = vld.sshfl [vmem:[#allocation1] sm:$0xff pattern:$0x75316420]  ;;  %v327_v22 = vld.sshfl [vmem:[#allocation1 + $0x8] sm:$0xff pattern:$0x75316420] }
  0x3f   : > { %336 = vst [vmem:[#allocation1] ss:$2 sm:$0xff] %v1003_v1  ;;  %v341_v23 = vld.sshfl [vmem:[#allocation1 + $0x10] sm:$0xff pattern:$0x75316420] }
  0x40   : > { %330 = vst [vmem:[#allocation3 + $0x48] sm:$0xf] %v326_v21  ;;  %346 = vrot.lane.b32.xlu2 %v341_v23, %s960_s20 }
  0x41   : > { %331 = vst [vmem:[#allocation3 + $0x28] sm:$0xf] %v327_v22 }
  0x42   : > { %369 = vst [vmem:[#allocation1 + $0x10] ss:$2 sm:$0xff] %v364_v20 }
  0x46   : > { %v339_v24 = vld.sshfl [vmem:[#allocation1] sm:$0xff pattern:$0x75316420]  ;;  %v340_v25 = vld.sshfl [vmem:[#allocation1 + $0x8] sm:$0xff pattern:$0x75316420] }
  0x47   : > { %342 = vrot.lane.b32.xlu1 %v339_v24, %s960_s20  ;;  %367 = vst [vmem:[#allocation1] ss:$2 sm:$0xff] %v1003_v1 }
  0x48   : > { %344 = vrot.lane.b32.xlu2 %v340_v25, %s960_s20 }
  0x49   : > { %v372_v27 = vld.sshfl [vmem:[#allocation1 + $0x10] sm:$0xff pattern:$0x75316420] }
  0x4a   : > { %395 = vst [vmem:[#allocation1 + $0x11] ss:$2 sm:$0xff] %v389_v26 }
  0x4e   : > { %v371_v28 = vld.sshfl [vmem:[#allocation1 + $0x8] sm:$0xff pattern:$0x75316420]  ;;  %v370_v29 = vld.sshfl [vmem:[#allocation1] sm:$0xff pattern:$0x75316420] }
  0x4f   : > { %375 = vrot.lane.b32.xlu1 %v371_v28, %s961_s21  ;;  %373 = vrot.lane.b32.xlu0 %v370_v29, %s961_s21  ;;  %393 = vst [vmem:[#allocation1 + $0x1] ss:$2 sm:$0xff] %v1003_v1 }
  0x50   : > { %377 = vrot.lane.b32.xlu2 %v372_v27, %s961_s21 }
  0x51   : > { %v398_v31 = vld.sshfl [vmem:[#allocation1 + $0x10] sm:$0xff pattern:$0x75316420] }
  0x52   : > { %418 = vst [vmem:[#allocation1 + $0x10] ss:$2 sm:$0xff] %v413_v30 }
  0x56   : > { %v396_v32 = vld.sshfl [vmem:[#allocation1] sm:$0xff pattern:$0x75316420]  ;;  %v397_v33 = vld.sshfl [vmem:[#allocation1 + $0x8] sm:$0xff pattern:$0x75316420] }
  0x57   : > { %399 = vrot.lane.b32.xlu0 %v396_v32, %s962_s22  ;;  %416 = vst [vmem:[#allocation1] ss:$2 sm:$0xff] %v1003_v1 }
  0x58   : > { %403 = vrot.lane.b32.xlu2 %v398_v31, %s962_s22 }
  0x59   : > { %v421_v34 = vld.sshfl [vmem:[#allocation1 + $0x10] sm:$0xff pattern:$0x75316420] }
  0x5a   : > { %426 = vrot.lane.b32.xlu1 %v421_v34, %s963_s23 }
  0x5e   : > { %v419_v35 = vld.sshfl [vmem:[#allocation1] sm:$0xff pattern:$0x75316420]  ;;  %v420_v36 = vld.sshfl [vmem:[#allocation1 + $0x8] sm:$0xff pattern:$0x75316420] }
  0x5f   : > { %422 = vrot.lane.b32.xlu0 %v419_v35, %s963_s23 }
  0x60   : > { %228 = vrot.lane.b32.xlu2 %v1010_v7, %s964_s24 }
  0x62   : > { %401 = vrot.lane.b32.xlu1 %v397_v33, %s962_s22 }
  0x67   : > { %424 = vrot.lane.b32.xlu0 %v420_v36, %s963_s23 }
  0x68   : > { %254 = vrot.lane.b32.xlu2 %v1016_v11, %s965_s25 }
  0x6a   : > { %226 = vrot.lane.b32.xlu1 %v1008_v6, %s964_s24 }
  0x6f   : > { %224 = vrot.lane.b32.xlu0 %v1006_v5, %s964_s24 }
  0x72   : > { %252 = vrot.lane.b32.xlu1 %v1014_v10, %s965_s25 }
  0x77   : > { %250 = vrot.lane.b32.xlu0 %v1012_v9, %s965_s25 }
  0x8a   : > { %v282_v37 = vpop.permute.xlu2 %281 }
  0x92   : > { %v307_v39 = vpop.permute.xlu2 %306 }
  0x9a   : > { %v347_v42 = vpop.permute.xlu2 %346 }
  0xa1   : > { %v280_v47 = vpop.permute.xlu1 %279  ;;  %v278_v48 = vpop.permute.xlu0 %277 }
  0xa2   : > { %v285_v49 = vsel %vm283_vm3, %v280_v47, %v282_v37  ;;  %v284_v50 = vsel %vm283_vm3, %v278_v48, %v280_v47  ;;  %v345_v51 = vpop.permute.xlu2 %344 }
  0xa3   : > { %v289_v52 = vsel %vm1053_vm4, %v285_v49, 0.0  ;;  %v288_v53 = vsel %vm1057_vm5, %v284_v50, 0.0  ;;  %v350_v54 = vsel %vm348_vm6, %v345_v51, %v347_v42  ;;  %v208_v49 = vld [vmem:[%s1225_s1] sm:$0xf] }
  0xa4   : > { %291 = vst [vmem:[#allocation3 + $0x10] sm:$0xf] %v289_v52  ;;  %v354_v55 = vsel %vm1053_vm4, %v350_v54, 0.0 }
  0xa5   : > { %290 = vst [vmem:[#allocation3 + $0x18] sm:$0xf] %v288_v53  ;;  %v358_v56 = vrot.slane %v354_v55, 4 }
  0xa7   : > { %362 = vst [vmem:[#allocation3 + $0x28] sm:$0xf0] %v358_v56 }
  0xa9   : > { %v305_v59 = vpop.permute.xlu1 %304  ;;  %v303_v60 = vpop.permute.xlu0 %302 }
  0xaa   : > { %v310_v61 = vsel %vm308_vm7, %v305_v59, %v307_v39  ;;  %v309_v62 = vsel %vm308_vm7, %v303_v60, %v305_v59  ;;  %v378_v8 = vpop.permute.xlu2 %377 }
  0xab   : > { %v314_v63 = vsel %vm1070_vm8, %v310_v61, 0.0  ;;  %v313_v0 = vsel %vm1074_vm9, %v309_v62, 0.0 }
  0xac   : > { %v318_v2 = vrot.slane %v314_v63, 4  ;;  %v317_v3 = vrot.slane %v313_v0, 4 }
  0xae   : > { %322 = vst [vmem:[#allocation3 + $0x10] sm:$0xf0] %v318_v2  ;;  %v442_v42 = vld [vmem:[#allocation3 + $0x28] sm:$0xff] }
  0xaf   : > { %321 = vst [vmem:[#allocation3 + $0x18] sm:$0xf0] %v317_v3 }
  0xb2   : > { %v404_v17 = vpop.permute.xlu2 %403 }
  0xb5   : > { %v440_v48 = vld [vmem:[#allocation3 + $0x10] sm:$0xff] }
  0xb6   : > { %v439_v44 = vld [vmem:[#allocation3 + $0x18] sm:$0xff] }
  0xb9   : > { %v343_v4 = vpop.permute.xlu1 %342 }
  0xba   : > { %v349_v5 = vsel %vm348_vm6, %v343_v4, %v345_v51  ;;  %v229_v22 = vpop.permute.xlu2 %228 }
  0xbb   : > { %v353_v6 = vsel %vm1057_vm5, %v349_v5, 0.0 }
  0xbc   : > { %v357_v7 = vrot.slane %v353_v6, 4 }
  0xbe   : > { %361 = vst [vmem:[#allocation3 + $0x48] sm:$0xf0] %v357_v7 }
  0xc1   : > { %v376_v9 = vpop.permute.xlu1 %375  ;;  %v374_v10 = vpop.permute.xlu0 %373 }
  0xc2   : > { %v380_v11 = vsel %vm379_vm10, %v374_v10, %v376_v9  ;;  %v381_v12 = vsel %vm379_vm10, %v376_v9, %v378_v8  ;;  %v255_v33 = vpop.permute.xlu2 %254 }
  0xc3   : > { %v384_v13 = vsel %vm1074_vm9, %v380_v11, 0.0  ;;  %v385_v14 = vsel %vm1070_vm8, %v381_v12, 0.0 }
  0xc4   : > { %386 = vst [vmem:[#allocation3 + $0x8] sm:$0xf] %v384_v13 }
  0xc5   : > { %387 = vst [vmem:[#allocation3 + $0x20] sm:$0xf] %v385_v14  ;;  %v441_v41 = vld [vmem:[#allocation3 + $0x48] sm:$0xff] }
  0xc9   : > { %v400_v15 = vpop.permute.xlu0 %399 }
  0xcc   : > { %v427_v16 = vpop.permute.xlu1 %426 }
  0xd1   : > { %v423_v18 = vpop.permute.xlu0 %422 }
  0xd4   : > { %v402_v19 = vpop.permute.xlu1 %401 }
  0xd5   : > { %v406_v20 = vsel %vm405_vm11, %v400_v15, %v402_v19  ;;  %v407_v21 = vsel %vm405_vm11, %v402_v19, %v404_v17 }
  0xd6   : > { %410 = vst [vmem:[#allocation3 + $0x8] sm:$0xf0] %v406_v20 }
  0xd7   : > { %411 = vst [vmem:[#allocation3 + $0x20] sm:$0xf0] %v407_v21 }
  0xd9   : > { %v425_v23 = vpop.permute.xlu0 %424 }
  0xda   : > { %v429_v24 = vsel %vm428_vm12, %v423_v18, %v425_v23  ;;  %v430_v25 = vsel %vm428_vm12, %v425_v23, %v427_v16 }
  0xdb   : > { %v433_v26 = vsel %vm1057_vm5, %v429_v24, 0.0  ;;  %v434_v27 = vsel %vm1053_vm4, %v430_v25, 0.0 }
  0xdc   : > { %435 = vst [vmem:[#allocation3 + $0x40] sm:$0xf] %v433_v26  ;;  %v227_v28 = vpop.permute.xlu1 %226 }
  0xdd   : > { %436 = vst [vmem:[#allocation3 + $0x38] sm:$0xf] %v434_v27  ;;  %v232_v29 = vsel %vm230_vm13, %v227_v28, %v229_v22  ;;  %v443_v39 = vld [vmem:[#allocation3 + $0x8] sm:$0xff] }
  0xde   : > { %v236_v30 = vsel %vm1070_vm8, %v232_v29, 0.0  ;;  %v444_v40 = vld [vmem:[#allocation3 + $0x20] sm:$0xff] }
  0xdf   : > { %238 = vst [vmem:[#allocation3] sm:$0xf] %v236_v30 }
  0xe1   : > { %v225_v31 = vpop.permute.xlu0 %224 }
  0xe2   : > { %v231_v32 = vsel %vm230_vm13, %v225_v31, %v227_v28 }
  0xe3   : > { %v235_v34 = vsel %vm1074_vm9, %v231_v32, 0.0  ;;  %v445_v35 = vld [vmem:[#allocation3 + $0x40] sm:$0xf] }
  0xe4   : > { %237 = vst [vmem:[#allocation3 + $0x30] sm:$0xf] %v235_v34  ;;  %v253_v36 = vpop.permute.xlu1 %252  ;;  %916 = vmatpush.msk.msra.mxu0 %vm204_vm0, %v445_v35  ;;  %v446_v37 = vld [vmem:[#allocation3 + $0x38] sm:$0xf] }
  0xe5   : > { %v258_v38 = vsel %vm256_vm14, %v253_v36, %v255_v33  ;;  %918 = vmatpush.msk.msra.mxu1 %vm204_vm0, %v446_v37  ;;  %v648_v37 = vld [vmem:[#allocation2 + $0xc] sm:$0xf] }
  0xe6   : > { %262 = vst [vmem:[#allocation3] sm:$0xf0] %v258_v38  ;;  %469 = vmatpush.msra.mxu0 %v443_v39 }
  0xe7   : > { %489 = vmatpush.msra.mxu1 %v444_v40 }
  0xe8   : > { %470 = vmatpush.msra.mxu0 %v441_v41  ;;  %v678_v41 = vld [vmem:[#allocation2 + $0xc] sm:$0xf] }
  0xe9   : > { %490 = vmatpush.msra.mxu1 %v442_v42  ;;  %v251_v43 = vpop.permute.xlu0 %250 }
  0xea   : > { %v257_v47 = vsel %vm256_vm14, %v251_v43, %v253_v36  ;;  %471 = vmatpush.msra.mxu0 %v439_v44 }
  0xeb   : > { %261 = vst [vmem:[#allocation3 + $0x30] sm:$0xf0] %v257_v47  ;;  %491 = vmatpush.msra.mxu1 %v440_v48  ;;  %v702_v47 = vld [vmem:[#allocation2 + $0xc] sm:$0xf] }
  0xed   : > { %v438_v50 = vld [vmem:[#allocation3] sm:$0xff] }
  0xee   : > { %492 = vmatpush.msra.mxu1 %v438_v50 }
  0xef   : > { %919 = vmatmul.msk.f32.vlgmr.msra.gmra.mxu1 %vm1228_vm15, %v208_v49 }
  0xf2   : > { %v437_v51 = vld [vmem:[#allocation3 + $0x30] sm:$0xff] }
  0xf3   : > { %472 = vmatpush.msra.mxu0 %v437_v51  ;;  %v725_v51 = vld [vmem:[#allocation2 + $0xc] sm:$0xf] }
  0xf4   : > { %917 = vmatmul.msk.f32.vlgmr.msra.gmra.mxu0 %vm1228_vm15, %v208_v49 }
 0x16c   : > { %v494_v52 = vpop.f32.mrf.mxu1 }
 0x16d   : > { %v504_v53 = vmul.f32 %v494_v52, %v494_v52  ;;  %v498_v54 = vsel %vm204_vm0, %v494_v52, 0.0 }
 0x16f   : > { %v506_v60 = vsel %vm204_vm0, %v504_v53, 0.0 }
 0x171   : > { %v474_v55 = vpop.f32.mrf.mxu0 }
 0x172   : > { %v497_v56 = vsel %vm204_vm0, %v474_v55, 0.0  ;;  %v503_v59 = vmul.f32 %v474_v55, %v474_v55 }
 0x173   : > { %v499_v61 = vadd.f32 %v498_v54, %v497_v56 }
 0x174   : > { %v505_v62 = vsel %vm204_vm0, %v503_v59, 0.0 }
 0x175   : > { %500 = vadd.xlane.f32.xlu0 %v499_v61  ;;  %v507_v63 = vadd.f32 %v506_v60, %v505_v62 }
 0x177   : > { %508 = vadd.xlane.f32.xlu1 %v507_v63 }
 0x1e8   : > { %v501_v0 = vpop.xlane.xlu0 %500 }
 0x1e9   : > { %v502_v2 = vmul.f32 0.00390625, %v501_v0 }
 0x1ea   : > { %v509_v3 = vpop.xlane.xlu1 %508 }
 0x1eb   : > { %v510_v4 = vmul.f32 0.00390625, %v509_v3  ;;  %v511_v5 = vmul.f32 %v502_v2, %v502_v2  ;;  %v513_v14 = vsub.f32 %v474_v55, %v502_v2  ;;  %v514_v15 = vsub.f32 %v494_v52, %v502_v2 }
 0x1ed   : > { %v512_v6 = vsub.f32 %v510_v4, %v511_v5 }
 0x1ef   : > { %v515_v7 = vadd.f32 1e-05, %v512_v6 }
 0x1f1   : > { %945 = vrsqrt.f32 %v515_v7  ;;  %vm522_vm2 = vweird.f32 %v515_v7 }
 0x1f7   : > { %v946_v8 = vpop.eup %945 }
 0x1f8   : > { %v517_v9 = vmul.f32 %v946_v8, %v515_v7  ;;  %vm523_vm1 = vweird.f32 %v946_v8 }
 0x1f9   : > { %vm524_vm15 = vmor %vm522_vm2, %vm523_vm1 }
 0x1fa   : > { %v518_v10 = vmul.f32 %v946_v8, %v517_v9 }
 0x1fc   : > { %v519_v11 = vmul.f32 0.5, %v518_v10 }
 0x1fe   : > { %v520_v12 = vsub.f32 1.5, %v519_v11 }
 0x200   : > { %v521_v13 = vmul.f32 %v946_v8, %v520_v12 }
 0x202   : > { %v525_v16 = vsel %vm524_vm15, %v946_v8, %v521_v13 }
 0x203   : > { %v526_v17 = vmul.f32 %v525_v16, %v513_v14  ;;  %v527_v18 = vmul.f32 %v525_v16, %v514_v15 }
 0x205   : > { %v529_v19 = vmax.f32 %v527_v18, 0.0  ;;  %v528_v20 = vmax.f32 %v526_v17, 0.0 }
 0x207   : > { %v533_v21 = vrot.slane %v529_v19, 4 }
 0x209   : > { %v1121_v22 = vsel %vm204_vm0, %v528_v20, %v533_v21 }
 0x20a   : > { %536 = vst [vmem:[#allocation2 + $0x4] sm:$0xff] %v1121_v22 }
 0x211   : > { %v537_v23 = vld [vmem:[#allocation2] sm:$0xff]  ;;  %v538_v24 = vld [vmem:[#allocation2 + $0x8] sm:$0xf] }
 0x212   : > { %541 = vst [vmem:[#allocation1] ss:$2 sm:$0xff] %v537_v23  ;;  %v562_v25 = vld [vmem:[#allocation2 + $0x8] sm:$0xf] }
 0x213   : > { %543 = vst [vmem:[#allocation1 + $0x10] ss:$2 sm:$0xff] %v538_v24  ;;  %v585_v29 = vld [vmem:[#allocation2 + $0x8] sm:$0xf] }
 0x214   : > { %v609_v33 = vld [vmem:[#allocation2 + $0x8] sm:$0xf] }
 0x219   : > { %v545_v26 = vld.sshfl [vmem:[#allocation1 + $0x8] sm:$0xff pattern:$0x75316420]  ;;  %v544_v27 = vld.sshfl [vmem:[#allocation1] sm:$0xff pattern:$0x75316420] }
 0x21a   : > { %549 = vrot.lane.b32.xlu0 %v545_v26, %s964_s24  ;;  %547 = vrot.lane.b32.xlu1 %v544_v27, %s964_s24  ;;  %566 = vst [vmem:[#allocation1 + $0x1] ss:$2 sm:$0xff] %v537_v23  ;;  %v1126_v28 = vld.sshfl [vmem:[#allocation1 + $0x10] sm:$0xff pattern:$0x75316420] }
 0x21b   : > { %568 = vst [vmem:[#allocation1 + $0x11] ss:$2 sm:$0xff] %v562_v25 }
 0x221   : > { %v569_v30 = vld.sshfl [vmem:[#allocation1] sm:$0xff pattern:$0x75316420]  ;;  %v570_v31 = vld.sshfl [vmem:[#allocation1 + $0x8] sm:$0xff pattern:$0x75316420] }
 0x222   : > { %v1128_v32 = vld.sshfl [vmem:[#allocation1 + $0x10] sm:$0xff pattern:$0x75316420]  ;;  %588 = vst [vmem:[#allocation1] ss:$2 sm:$0xff] %v537_v23 }
 0x223   : > { %590 = vst [vmem:[#allocation1 + $0x10] ss:$2 sm:$0xff] %v585_v29 }
 0x229   : > { %v592_v34 = vld.sshfl [vmem:[#allocation1 + $0x8] sm:$0xff pattern:$0x75316420]  ;;  %v591_v35 = vld.sshfl [vmem:[#allocation1] sm:$0xff pattern:$0x75316420] }
 0x22a   : > { %v593_v36 = vld.sshfl [vmem:[#allocation1 + $0x10] sm:$0xff pattern:$0x75316420]  ;;  %596 = vrot.lane.b32.xlu0 %v592_v34, %s958_s18  ;;  %594 = vrot.lane.b32.xlu1 %v591_v35, %s958_s18  ;;  %612 = vst [vmem:[#allocation1] ss:$2 sm:$0xff] %v537_v23 }
 0x22b   : > { %598 = vrot.lane.b32.xlu2 %v593_v36, %s958_s18  ;;  %614 = vst [vmem:[#allocation1 + $0x10] ss:$2 sm:$0xff] %v609_v33 }
 0x231   : > { %v616_v38 = vld.sshfl [vmem:[#allocation1 + $0x8] sm:$0xff pattern:$0x75316420]  ;;  %v615_v39 = vld.sshfl [vmem:[#allocation1] sm:$0xff pattern:$0x75316420] }
 0x232   : > { %v617_v40 = vld.sshfl [vmem:[#allocation1 + $0x10] sm:$0xff pattern:$0x75316420]  ;;  %620 = vrot.lane.b32.xlu0 %v616_v38, %s959_s19  ;;  %618 = vrot.lane.b32.xlu1 %v615_v39, %s959_s19  ;;  %640 = vst [vmem:[#allocation1] ss:$2 sm:$0xff] %v1121_v22 }
 0x233   : > { %622 = vrot.lane.b32.xlu2 %v617_v40, %s959_s19  ;;  %653 = vst [vmem:[#allocation1 + $0x10] ss:$2 sm:$0xff] %v648_v37 }
 0x239   : > { %v641_v42 = vld.sshfl [vmem:[#allocation1] sm:$0xff pattern:$0x75316420]  ;;  %v642_v43 = vld.sshfl [vmem:[#allocation1 + $0x8] sm:$0xff pattern:$0x75316420] }
 0x23a   : > { %645 = vst [vmem:[#allocation3 + $0x48] sm:$0xf] %v641_v42  ;;  %v656_v44 = vld.sshfl [vmem:[#allocation1 + $0x10] sm:$0xff pattern:$0x75316420] }
 0x23b   : > { %646 = vst [vmem:[#allocation3 + $0x28] sm:$0xf] %v642_v43  ;;  %661 = vrot.lane.b32.xlu2 %v656_v44, %s960_s20 }
 0x23c   : > { %651 = vst [vmem:[#allocation1] ss:$2 sm:$0xff] %v1121_v22 }
 0x23d   : > { %683 = vst [vmem:[#allocation1 + $0x10] ss:$2 sm:$0xff] %v678_v41 }
 0x243   : > { %v654_v48 = vld.sshfl [vmem:[#allocation1] sm:$0xff pattern:$0x75316420]  ;;  %v655_v49 = vld.sshfl [vmem:[#allocation1 + $0x8] sm:$0xff pattern:$0x75316420] }
 0x244   : > { %657 = vrot.lane.b32.xlu2 %v654_v48, %s960_s20  ;;  %681 = vst [vmem:[#allocation1] ss:$2 sm:$0xff] %v1121_v22  ;;  %v686_v50 = vld.sshfl [vmem:[#allocation1 + $0x10] sm:$0xff pattern:$0x75316420] }
 0x245   : > { %708 = vst [vmem:[#allocation1 + $0x11] ss:$2 sm:$0xff] %v702_v47 }
 0x24b   : > { %v685_v52 = vld.sshfl [vmem:[#allocation1 + $0x8] sm:$0xff pattern:$0x75316420]  ;;  %v684_v53 = vld.sshfl [vmem:[#allocation1] sm:$0xff pattern:$0x75316420] }
 0x24c   : > { %659 = vrot.lane.b32.xlu2 %v655_v49, %s960_s20  ;;  %689 = vrot.lane.b32.xlu1 %v685_v52, %s961_s21  ;;  %706 = vst [vmem:[#allocation1 + $0x1] ss:$2 sm:$0xff] %v1121_v22  ;;  %v711_v54 = vld.sshfl [vmem:[#allocation1 + $0x10] sm:$0xff pattern:$0x75316420] }
 0x24d   : > { %687 = vrot.lane.b32.xlu0 %v684_v53, %s961_s21  ;;  %730 = vst [vmem:[#allocation1 + $0x10] ss:$2 sm:$0xff] %v725_v51 }
 0x253   : > { %v710_v55 = vld.sshfl [vmem:[#allocation1 + $0x8] sm:$0xff pattern:$0x75316420]  ;;  %v709_v56 = vld.sshfl [vmem:[#allocation1] sm:$0xff pattern:$0x75316420] }
 0x254   : > { %691 = vrot.lane.b32.xlu2 %v686_v50, %s961_s21  ;;  %572 = vrot.lane.b32.xlu1 %v569_v30, %s965_s25  ;;  %728 = vst [vmem:[#allocation1] ss:$2 sm:$0xff] %v1121_v22  ;;  %v733_v61 = vld.sshfl [vmem:[#allocation1 + $0x10] sm:$0xff pattern:$0x75316420] }
 0x255   : > { %714 = vrot.lane.b32.xlu0 %v710_v55, %s962_s22 }
 0x25b   : > { %v731_v59 = vld.sshfl [vmem:[#allocation1] sm:$0xff pattern:$0x75316420]  ;;  %v732_v60 = vld.sshfl [vmem:[#allocation1 + $0x8] sm:$0xff pattern:$0x75316420] }
 0x25c   : > { %716 = vrot.lane.b32.xlu2 %v711_v54, %s962_s22  ;;  %839 = vst [vmem:[#allocation1] ss:$2 sm:$0xff] %v1003_v1 }
 0x25d   : > { %574 = vrot.lane.b32.xlu0 %v570_v31, %s965_s25 }
 0x264   : > { %738 = vrot.lane.b32.xlu2 %v733_v61, %s963_s23 }
 0x26c   : > { %712 = vrot.lane.b32.xlu2 %v709_v56, %s962_s22 }
 0x274   : > { %734 = vrot.lane.b32.xlu2 %v731_v59, %s963_s23 }
 0x27c   : > { %736 = vrot.lane.b32.xlu2 %v732_v60, %s963_s23 }
 0x284   : > { %551 = vrot.lane.b32.xlu2 %v1126_v28, %s964_s24 }
 0x285   : > { %v599_v62 = vpop.permute.xlu2 %598 }
 0x28c   : > { %576 = vrot.lane.b32.xlu2 %v1128_v32, %s965_s25  ;;  %v1160_v63 = vpop.permute.xlu0 %549  ;;  %v548_v1 = vpop.permute.xlu1 %547 }
 0x28d   : > { %v623_v0 = vpop.permute.xlu2 %622  ;;  %v553_v2 = vsel %vm230_vm13, %v548_v1, %v1160_v63 }
 0x28e   : > { %v557_v3 = vsel %vm1074_vm9, %v553_v2, 0.0 }
 0x28f   : > { %559 = vst [vmem:[#allocation3 + $0x30] sm:$0xf] %v557_v3 }
 0x295   : > { %v662_v4 = vpop.permute.xlu2 %661 }
 0x29c   : > { %v597_v5 = vpop.permute.xlu0 %596  ;;  %v595_v6 = vpop.permute.xlu1 %594 }
 0x29d   : > { %v601_v7 = vsel %vm283_vm3, %v597_v5, %v599_v62  ;;  %v600_v8 = vsel %vm283_vm3, %v595_v6, %v597_v5  ;;  %v530_v62 = vld [vmem:[%s1226_s2] sm:$0xf]  ;;  %vm1237_vm3 = vcmask 293888  }
 0x29e   : > { %v605_v9 = vsel %vm1053_vm4, %v601_v7, 0.0  ;;  %v604_v10 = vsel %vm1057_vm5, %v600_v8, 0.0  ;;  %v658_v11 = vpop.permute.xlu2 %657 }
 0x29f   : > { %607 = vst [vmem:[#allocation3 + $0x10] sm:$0xf] %v605_v9 }
 0x2a0   : > { %606 = vst [vmem:[#allocation3 + $0x18] sm:$0xf] %v604_v10 }
 0x2a4   : > { %v621_v12 = vpop.permute.xlu0 %620  ;;  %v619_v13 = vpop.permute.xlu1 %618 }
 0x2a5   : > { %v625_v14 = vsel %vm308_vm7, %v621_v12, %v623_v0  ;;  %v624_v15 = vsel %vm308_vm7, %v619_v13, %v621_v12 }
 0x2a6   : > { %v629_v16 = vsel %vm1070_vm8, %v625_v14, 0.0  ;;  %v628_v17 = vsel %vm1074_vm9, %v624_v15, 0.0  ;;  %v660_v18 = vpop.permute.xlu2 %659 }
 0x2a7   : > { %v633_v19 = vrot.slane %v629_v16, 4  ;;  %v632_v20 = vrot.slane %v628_v17, 4  ;;  %v663_v21 = vsel %vm348_vm6, %v658_v11, %v660_v18  ;;  %v664_v22 = vsel %vm348_vm6, %v660_v18, %v662_v4 }
 0x2a8   : > { %v667_v23 = vsel %vm1057_vm5, %v663_v21, 0.0  ;;  %v668_v24 = vsel %vm1053_vm4, %v664_v22, 0.0 }
 0x2a9   : > { %637 = vst [vmem:[#allocation3 + $0x10] sm:$0xf0] %v633_v19  ;;  %v671_v25 = vrot.slane %v667_v23, 4  ;;  %v672_v26 = vrot.slane %v668_v24, 4 }
 0x2aa   : > { %636 = vst [vmem:[#allocation3 + $0x18] sm:$0xf0] %v632_v20 }
 0x2ab   : > { %675 = vst [vmem:[#allocation3 + $0x48] sm:$0xf0] %v671_v25 }
 0x2ac   : > { %676 = vst [vmem:[#allocation3 + $0x28] sm:$0xf0] %v672_v26 }
 0x2ae   : > { %v692_v27 = vpop.permute.xlu2 %691 }
 0x2b0   : > { %v751_v61 = vld [vmem:[#allocation3 + $0x10] sm:$0xff] }
 0x2b1   : > { %v750_v60 = vld [vmem:[#allocation3 + $0x18] sm:$0xff] }
 0x2b2   : > { %v752_v55 = vld [vmem:[#allocation3 + $0x48] sm:$0xff] }
 0x2b3   : > { %v753_v56 = vld [vmem:[#allocation3 + $0x28] sm:$0xff] }
 0x2b6   : > { %v717_v28 = vpop.permute.xlu2 %716 }
 0x2be   : > { %v739_v29 = vpop.permute.xlu2 %738  ;;  %v690_v30 = vpop.permute.xlu1 %689 }
 0x2bf   : > { %v694_v31 = vsel %vm379_vm10, %v690_v30, %v692_v27  ;;  %v688_v32 = vpop.permute.xlu0 %687 }
 0x2c0   : > { %v698_v33 = vsel %vm1070_vm8, %v694_v31, 0.0  ;;  %v693_v34 = vsel %vm379_vm10, %v688_v32, %v690_v30  ;;  %v840_v31 = vld.sshfl [vmem:[#allocation1] sm:$0xff pattern:$0x75316420] }
 0x2c1   : > { %700 = vst [vmem:[#allocation3 + $0x20] sm:$0xf] %v698_v33  ;;  %v697_v35 = vsel %vm1074_vm9, %v693_v34, 0.0 }
 0x2c2   : > { %699 = vst [vmem:[#allocation3 + $0x8] sm:$0xf] %v697_v35 }
 0x2c6   : > { %v713_v36 = vpop.permute.xlu2 %712  ;;  %v573_v41 = vpop.permute.xlu1 %572 }
 0x2c7   : > { %v715_v37 = vpop.permute.xlu0 %714 }
 0x2c8   : > { %v719_v38 = vsel %vm405_vm11, %v715_v37, %v717_v28  ;;  %v718_v39 = vsel %vm405_vm11, %v713_v36, %v715_v37 }
 0x2c9   : > { %723 = vst [vmem:[#allocation3 + $0x20] sm:$0xf0] %v719_v38 }
 0x2ca   : > { %722 = vst [vmem:[#allocation3 + $0x8] sm:$0xf0] %v718_v39 }
 0x2ce   : > { %v735_v40 = vpop.permute.xlu2 %734 }
 0x2cf   : > { %v575_v42 = vpop.permute.xlu0 %574 }
 0x2d0   : > { %v578_v43 = vsel %vm256_vm14, %v573_v41, %v575_v42  ;;  %v755_v45 = vld [vmem:[#allocation3 + $0x20] sm:$0xff] }
 0x2d1   : > { %582 = vst [vmem:[#allocation3 + $0x30] sm:$0xf0] %v578_v43  ;;  %v754_v46 = vld [vmem:[#allocation3 + $0x8] sm:$0xff] }
 0x2d6   : > { %v737_v44 = vpop.permute.xlu2 %736 }
 0x2d7   : > { %v740_v47 = vsel %vm428_vm12, %v735_v40, %v737_v44  ;;  %v741_v58 = vsel %vm428_vm12, %v737_v44, %v739_v29  ;;  %v841_v29 = vld.sshfl [vmem:[#allocation1 + $0x8] sm:$0xff pattern:$0x75316420] }
 0x2d8   : > { %v744_v48 = vsel %vm1057_vm5, %v740_v47, 0.0  ;;  %v745_v49 = vsel %vm1053_vm4, %v741_v58, 0.0  ;;  %vm1238_vm4 = vmmov %vm1237_vm3 }
 0x2d9   : > { %746 = vst [vmem:[#allocation3 + $0x40] sm:$0xf] %v744_v48 }
 0x2da   : > { %747 = vst [vmem:[#allocation3 + $0x38] sm:$0xf] %v745_v49 }
 0x2de   : > { %v552_v50 = vpop.permute.xlu2 %551 }
 0x2df   : > { %v554_v51 = vsel %vm230_vm13, %v1160_v63, %v552_v50  ;;  %v748_v63 = vld [vmem:[#allocation3 + $0x30] sm:$0xff] }
 0x2e0   : > { %v558_v52 = vsel %vm1070_vm8, %v554_v51, 0.0  ;;  %v756_v53 = vld [vmem:[#allocation3 + $0x40] sm:$0xf] }
 0x2e1   : > { %560 = vst [vmem:[#allocation3] sm:$0xf] %v558_v52  ;;  %920 = vmatpush.msk.msra.mxu2 %vm204_vm0, %v756_v53  ;;  %v757_v54 = vld [vmem:[#allocation3 + $0x38] sm:$0xf] }
 0x2e2   : > { %922 = vmatpush.msk.msra.mxu3 %vm204_vm0, %v757_v54 }
 0x2e3   : > { %779 = vmatpush.msra.mxu2 %v754_v46 }
 0x2e4   : > { %799 = vmatpush.msra.mxu3 %v755_v45 }
 0x2e5   : > { %780 = vmatpush.msra.mxu2 %v752_v55 }
 0x2e6   : > { %800 = vmatpush.msra.mxu3 %v753_v56  ;;  %v577_v59 = vpop.permute.xlu2 %576 }
 0x2e7   : > { %v579_v57 = vsel %vm256_vm14, %v575_v42, %v577_v59  ;;  %781 = vmatpush.msra.mxu2 %v750_v60 }
 0x2e8   : > { %583 = vst [vmem:[#allocation3] sm:$0xf0] %v579_v57  ;;  %801 = vmatpush.msra.mxu3 %v751_v61 }
 0x2e9   : > { %782 = vmatpush.msra.mxu2 %v748_v63 }
 0x2ea   : > { %921 = vmatmul.msk.f32.vlgmr.msra.gmra.mxu2 %vm1237_vm3, %v530_v62 }
 0x2ef   : > { %v749_v1 = vld [vmem:[#allocation3] sm:$0xff] }
 0x2f0   : > { %802 = vmatpush.msra.mxu3 %v749_v1 }
 0x2f1   : > { %923 = vmatmul.msk.f32.vlgmr.msra.gmra.mxu3 %vm1238_vm4, %v530_v62 }
 0x36d   : > { %v784_v0 = vpop.f32.mrf.mxu2 }
 0x36e   : > { %v813_v2 = vmul.f32 %v784_v0, %v784_v0  ;;  %v807_v3 = vsel %vm204_vm0, %v784_v0, 0.0 }
 0x370   : > { %v815_v7 = vsel %vm204_vm0, %v813_v2, 0.0 }
 0x374   : > { %v804_v4 = vpop.f32.mrf.mxu3 }
 0x375   : > { %v808_v5 = vsel %vm204_vm0, %v804_v4, 0.0  ;;  %v814_v6 = vmul.f32 %v804_v4, %v804_v4 }
 0x376   : > { %v809_v8 = vadd.f32 %v808_v5, %v807_v3 }
 0x377   : > { %v816_v9 = vsel %vm204_vm0, %v814_v6, 0.0 }
 0x378   : > { %810 = vadd.xlane.f32.xlu1 %v809_v8  ;;  %v817_v10 = vadd.f32 %v816_v9, %v815_v7 }
 0x37a   : > { %818 = vadd.xlane.f32.xlu0 %v817_v10 }
 0x3eb   : > { %v811_v11 = vpop.xlane.xlu1 %810 }
 0x3ec   : > { %v812_v12 = vmul.f32 0.00390625, %v811_v11 }
 0x3ed   : > { %v819_v13 = vpop.xlane.xlu0 %818 }
 0x3ee   : > { %v820_v14 = vmul.f32 0.00390625, %v819_v13  ;;  %v821_v15 = vmul.f32 %v812_v12, %v812_v12  ;;  %v823_v24 = vsub.f32 %v784_v0, %v812_v12  ;;  %v824_v25 = vsub.f32 %v804_v4, %v812_v12 }
 0x3f0   : > { %v822_v16 = vsub.f32 %v820_v14, %v821_v15 }
 0x3f2   : > { %v825_v17 = vadd.f32 1e-05, %v822_v16 }
 0x3f4   : > { %947 = vrsqrt.f32 %v825_v17  ;;  %vm832_vm6 = vweird.f32 %v825_v17 }
 0x3fa   : > { %v948_v18 = vpop.eup %947 }
 0x3fb   : > { %v827_v19 = vmul.f32 %v948_v18, %v825_v17  ;;  %vm833_vm5 = vweird.f32 %v948_v18 }
 0x3fc   : > { %vm834_vm7 = vmor %vm832_vm6, %vm833_vm5 }
 0x3fd   : > { %v828_v20 = vmul.f32 %v948_v18, %v827_v19 }
 0x3ff   : > { %v829_v21 = vmul.f32 0.5, %v828_v20 }
 0x401   : > { %v830_v22 = vsub.f32 1.5, %v829_v21 }
 0x403   : > { %v831_v23 = vmul.f32 %v948_v18, %v830_v22 }
 0x405   : > { %v835_v26 = vsel %vm834_vm7, %v948_v18, %v831_v23 }
 0x406   : > { %v836_v27 = vmul.f32 %v835_v26, %v823_v24  ;;  %v837_v28 = vmul.f32 %v835_v26, %v824_v25 }
 0x408   : > { %v845_v30 = vadd.f32 %v841_v29, %v837_v28  ;;  %v844_v32 = vadd.f32 %v840_v31, %v836_v27 }
 0x40a   : > { %v848_v33 = vrot.slane %v845_v30, 4 }
 0x40c   : > { %v849_v34 = vsel %vm204_vm0, %v844_v32, %v848_v33 }
 0x40d   : > { %851 = vst [vmem:[%s170_s5] sm:$0xff] %v849_v34 }
 0x40e PF: > { %s13_s12 = sadd.s32 1, %s955_s12  }
 0x40f   : > { %p10_p4 = scmp.ge.s32.totalorder %s13_s12, 4  }
 0x411   :  { %12 = sbr.rel (!%p10_p4) target bundleno = 1 (0x1), region = 82 }

</bundles_post_ra>
